<compile_context>
chip_gen: v6e
topology: v6e:2x2x1
jax: 0.10.0
libtpu: 0.0.40
codegen_flags: <defaults>
</compile_context>

<pallas_src>
import functools

import jax
import jax.numpy as jnp
from jax.experimental import pallas as pl
from jax.experimental.pallas import tpu as pltpu


def _round_up(v: int, m: int) -> int:
    return ((v + m - 1) // m) * m


def gcn_kernel(*refs, project_last):
    """Grid = (node_blocks, edge_blocks); edge axis is the reduction axis.

    refs when project_last=True : (x, W^T, b, src, tgt, w_norm, out, acc)
    refs when project_last=False: (xW^T,     b, src, tgt, w_norm, out, acc)
    """
    if project_last:
        x_ref, w_ref, b_ref, src_ref, tgt_ref, wn_ref, o_ref, acc_ref = refs
    else:
        x_ref, b_ref, src_ref, tgt_ref, wn_ref, o_ref, acc_ref = refs
        w_ref = None

    eb = pl.program_id(1)
    n_edge_blocks = pl.num_programs(1)

    @pl.when(eb == 0)
    def _init():
        acc_ref[...] = jnp.zeros_like(acc_ref)

    x = x_ref[...]            # [N_pad, feat_pad] f32 (resident across the grid)
    src = src_ref[...]        # [TILE_E, 1] int32
    tgt = tgt_ref[...]        # [1, TILE_E] int32
    wn = wn_ref[...]          # [1, TILE_E] f32 (precomputed edge normalization)

    tile_e = src.shape[0]
    n_pad = x.shape[0]
    tile_n = acc_ref.shape[0]

    # Gather x[src] on the MXU: exact 0/1 incidence [TILE_E, N_pad] @ x.
    node_ids = jax.lax.broadcasted_iota(jnp.int32, (tile_e, n_pad), 1)
    onehot_src = (src == node_ids).astype(x.dtype)
    gathered = jnp.dot(onehot_src, x,
                       preferred_element_type=jnp.float32)      # [TILE_E, feat_pad]

    # Scatter-add into this node block with the normalization folded into the
    # (already transposed) target incidence matrix -> no extra [E, D] pass.
    row_ids = (jax.lax.broadcasted_iota(jnp.int32, (tile_n, tile_e), 0)
               + pl.program_id(0) * tile_n)
    scatter_t = jnp.where(tgt == row_ids, wn, 0.0)               # [TILE_N, TILE_E]
    acc_ref[...] += jnp.dot(scatter_t, gathered,
                            preferred_element_type=jnp.float32)  # [TILE_N, feat_pad]

    # Last edge block: finalize and lane-dense store of this node block.
    @pl.when(eb == n_edge_blocks - 1)
    def _finalize():
        agg = acc_ref[...]
        if project_last:
            out = jnp.dot(agg, w_ref[...],
                          preferred_element_type=jnp.float32) + b_ref[...]
        else:
            out = agg + b_ref[...]    # features were pre-projected to Dout
        o_ref[...] = out.astype(o_ref.dtype)


def gcn_forward(x, edge_index, weight, bias, edge_weight=None,
                add_self_loops=True, tile_n=128, tile_e=512):
    """x: [N, Din] f32; edge_index: [2, E] int; weight: [Dout, Din]; bias: [Dout]."""
    n_nodes, in_dim = x.shape
    out_dim = weight.shape[0]
    n_edges = edge_index.shape[1]

    src = edge_index[0].astype(jnp.int32)
    tgt = edge_index[1].astype(jnp.int32)
    if edge_weight is None:
        # torch uses int64 ones; everything is promoted to float before sqrt,
        # so f32 here reproduces the same numerics.
        ew = jnp.ones((n_edges,), dtype=jnp.float32)
    else:
        ew = edge_weight.astype(jnp.float32)
    if add_self_loops:
        loops = jnp.arange(n_nodes, dtype=jnp.int32)
        src = jnp.concatenate([src, loops])
        tgt = jnp.concatenate([tgt, loops])
        ew = jnp.concatenate([ew, jnp.ones((n_nodes,), jnp.float32)])
    e_tot = src.shape[0]

    # Per-edge symmetric normalization precomputed with an O(E) segment-sum
    # (matches torch: deg from src, 1/sqrt, gather at src/tgt).
    deg = jnp.zeros((n_nodes,), jnp.float32).at[src].add(ew)
    deg_inv_sqrt = jax.lax.rsqrt(deg)        # EUP rsqrt; inf on deg==0 like torch
    w_norm = ew * deg_inv_sqrt[src] * deg_inv_sqrt[tgt]

    # ---- pad to MXU / vreg-friendly shapes ---------------------------------
    tile_n = min(tile_n, _round_up(n_nodes, 8))
    n_pad = _round_up(n_nodes, tile_n)
    tile_e = min(tile_e, _round_up(e_tot, 128))
    e_pad = _round_up(e_tot, tile_e)
    din_pad = _round_up(in_dim, 128)
    dout_pad = _round_up(out_dim, 128)       # lane-dense output stores

    f32 = jnp.float32
    x_p = jnp.zeros((n_pad, din_pad), f32).at[:n_nodes, :in_dim].set(x.astype(f32))
    w_p = jnp.zeros((din_pad, dout_pad), f32).at[:in_dim, :out_dim].set(
        weight.T.astype(f32))
    b_p = jnp.zeros((1, dout_pad), f32).at[0, :out_dim].set(bias.astype(f32))

    # Aggregate in the narrower feature space: if Dout < Din, project x once
    # (one XLA matmul) and aggregate Dout-wide features; otherwise aggregate
    # raw x and project inside the kernel at finalize.
    project_last = dout_pad >= din_pad
    if project_last:
        feats = x_p                 # [n_pad, din_pad]
        feat_pad = din_pad
    else:
        feats = x_p @ w_p           # [n_pad, dout_pad]
        feat_pad = dout_pad

    # src as a column (for the gather one-hot), tgt / w_norm as lane-major rows
    # (for the transposed scatter one-hot). Padding edges get w_norm = 0.
    src_p = jnp.zeros((e_pad, 1), jnp.int32).at[:e_tot, 0].set(src)
    tgt_p = jnp.zeros((1, e_pad), jnp.int32).at[0, :e_tot].set(tgt)
    wn_p = jnp.zeros((1, e_pad), f32).at[0, :e_tot].set(w_norm)

    grid = (n_pad // tile_n, e_pad // tile_e)

    in_specs = [pl.BlockSpec((n_pad, feat_pad), lambda i, e: (0, 0))]   # features (resident)
    inputs = [feats]
    if project_last:
        in_specs.append(pl.BlockSpec((din_pad, dout_pad), lambda i, e: (0, 0)))  # W^T
        inputs.append(w_p)
    in_specs += [
        pl.BlockSpec((1, dout_pad), lambda i, e: (0, 0)),        # bias
        pl.BlockSpec((tile_e, 1), lambda i, e: (e, 0)),          # src column
        pl.BlockSpec((1, tile_e), lambda i, e: (0, e)),          # tgt row
        pl.BlockSpec((1, tile_e), lambda i, e: (0, e)),          # w_norm row
    ]
    inputs += [b_p, src_p, tgt_p, wn_p]

    out_p = pl.pallas_call(
        functools.partial(gcn_kernel, project_last=project_last),
        out_shape=jax.ShapeDtypeStruct((n_pad, dout_pad), f32),
        grid_spec=pltpu.PrefetchScalarGridSpec(
            num_scalar_prefetch=0,
            grid=grid,
            in_specs=in_specs,
            out_specs=pl.BlockSpec((tile_n, dout_pad), lambda i, e: (i, 0)),
            scratch_shapes=[pltpu.VMEM((tile_n, feat_pad), jnp.float32)],
        ),
        compiler_params=pltpu.CompilerParams(
            dimension_semantics=("parallel", "arbitrary"),
            # Explicit scoped-VMEM budget: fits comfortably on v5e/v6e/v7x
            # (v7x has only 64 MiB physical / 32 MiB default-scoped VMEM).
            vmem_limit_bytes=32 * 1024 * 1024,
        ),
    )(*inputs)

    return out_p[:n_nodes, :out_dim]


def gcn_reference(x, edge_index, weight, bias, add_self_loops=True):
    """Pure-JAX reference mirroring the PyTorch forward."""
    n_nodes, in_dim = x.shape
    src = edge_index[0]
    tgt = edge_index[1]
    ew = jnp.ones((edge_index.shape[1],), dtype=jnp.float32)
    if add_self_loops:
        loops = jnp.arange(n_nodes, dtype=edge_index.dtype)
        src = jnp.concatenate([src, loops])
        tgt = jnp.concatenate([tgt, loops])
        ew = jnp.concatenate([ew, jnp.ones((n_nodes,), dtype=ew.dtype)])
    deg = jnp.zeros((n_nodes,), jnp.float32).at[src].add(ew)
    dis = 1.0 / jnp.sqrt(deg)
    w_norm = ew * dis[src] * dis[tgt]
    x_msg = x[src] * w_norm[:, None]
    x_agg = jnp.zeros((n_nodes, in_dim), jnp.float32).at[tgt].add(x_msg)
    return x_agg @ weight.T + bias


if __name__ == "__main__":
    key = jax.random.PRNGKey(0)
    k_x, k_w, k_b, k_e = jax.random.split(key, 4)

    num_nodes = 8
    in_dim = 16
    out_dim = 32
    num_edges = 12

    x = jax.random.normal(k_x, (num_nodes, in_dim), dtype=jnp.float32)
    # Dense(in_dim, out_dim): weight [out_dim, in_dim], bias [out_dim]
    weight = jax.random.normal(k_w, (out_dim, in_dim), dtype=jnp.float32) * 0.1
    bias = jax.random.normal(k_b, (out_dim,), dtype=jnp.float32) * 0.1
    edge_index = jax.random.randint(k_e, (2, num_edges), 0, num_nodes,
                                    dtype=jnp.int32)

    out = gcn_forward(x, edge_index, weight, bias)
    out = jax.block_until_ready(out)

    ref = gcn_reference(x, edge_index, weight, bias)
    assert out.shape == (num_nodes, out_dim)
    assert jnp.allclose(out, ref, atol=1e-4, rtol=1e-4), (
        f"max abs err = {jnp.max(jnp.abs(out - ref))}")
    print("KERNEL_OK")
</pallas_src>

<mosaic_0001>
module attributes {stable_mosaic.version = 11 : i64} {
  func.func @gcn_kernel(%arg0: i32, %arg1: i32, %arg2: memref<8x128xf32, #tpu.memory_space<vmem>>, %arg3: memref<128x128xf32, #tpu.memory_space<vmem>>, %arg4: memref<1x128xf32, #tpu.memory_space<vmem>>, %arg5: memref<128x1xi32, #tpu.memory_space<vmem>>, %arg6: memref<1x128xi32, #tpu.memory_space<vmem>>, %arg7: memref<1x128xf32, #tpu.memory_space<vmem>>, %arg8: memref<8x128xf32, #tpu.memory_space<vmem>>, %arg9: memref<8x128xf32, #tpu.memory_space<vmem>>) attributes {dimension_semantics = [#tpu.dimension_semantics<parallel>, #tpu.dimension_semantics<arbitrary>], iteration_bounds = array<i64: 1, 1>, scalar_prefetch = 0 : i64, scratch_operands = 1 : i64, tpu.core_type = #tpu.core_type<tc>, window_params = [{pipeline_mode = #tpu.pipeline_mode<synchronous>, transform_indices = @transform_0, window_bounds = array<i64: 8, 128>}, {pipeline_mode = #tpu.pipeline_mode<synchronous>, transform_indices = @transform_1, window_bounds = array<i64: 128, 128>}, {pipeline_mode = #tpu.pipeline_mode<synchronous>, transform_indices = @transform_2, window_bounds = array<i64: 1, 128>}, {transform_indices = @transform_3, window_bounds = array<i64: 128, 1>}, {transform_indices = @transform_4, window_bounds = array<i64: 1, 128>}, {transform_indices = @transform_5, window_bounds = array<i64: 1, 128>}, {transform_indices = @transform_6, window_bounds = array<i64: 8, 128>}]} {
    %c0_i32 = arith.constant 0 : i32
    %0 = arith.cmpi eq, %arg1, %c0_i32 : i32
    %1 = arith.extui %0 : i1 to i32
    %c0_i32_0 = arith.constant 0 : i32
    %2 = arith.cmpi ne, %1, %c0_i32_0 : i32
    scf.if %2 {
      %cst_16 = arith.constant 0.000000e+00 : f32
      %30 = vector.broadcast %cst_16 : f32 to vector<8x128xf32>
      %c0_17 = arith.constant 0 : index
      %c0_18 = arith.constant 0 : index
      %31 = vector.load %arg9[%c0_17, %c0_18] : memref<8x128xf32, #tpu.memory_space<vmem>>, vector<8x128xf32>
      tpu.vector_store %arg9[%c0_17, %c0_18], %30 {strides = array<i32>} : memref<8x128xf32, #tpu.memory_space<vmem>>, vector<8x128xf32>,
    } else {
    }
    %c0 = arith.constant 0 : index
    %c0_1 = arith.constant 0 : index
    %3 = vector.load %arg2[%c0, %c0_1] : memref<8x128xf32, #tpu.memory_space<vmem>>, vector<8x128xf32>
    %c0_2 = arith.constant 0 : index
    %c0_3 = arith.constant 0 : index
    %4 = vector.load %arg5[%c0_2, %c0_3] : memref<128x1xi32, #tpu.memory_space<vmem>>, vector<128x1xi32>
    %c0_4 = arith.constant 0 : index
    %c0_5 = arith.constant 0 : index
    %5 = vector.load %arg6[%c0_4, %c0_5] : memref<1x128xi32, #tpu.memory_space<vmem>>, vector<1x128xi32>
    %c0_6 = arith.constant 0 : index
    %c0_7 = arith.constant 0 : index
    %6 = vector.load %arg7[%c0_6, %c0_7] : memref<1x128xf32, #tpu.memory_space<vmem>>, vector<1x128xf32>
    %7 = tpu.iota {dimensions = array<i32: 1>} : vector<128x8xi32>
    %8 = vector.broadcast %4 : vector<128x1xi32> to vector<128x8xi32>
    %9 = arith.cmpi eq, %8, %7 : vector<128x8xi32>
    %10 = arith.extui %9 : vector<128x8xi1> to vector<128x8xi32>
    %11 = arith.sitofp %10 : vector<128x8xi32> to vector<128x8xf32>
    %cst = arith.constant dense<0.000000e+00> : vector<128x128xf32>
    %12 = tpu.matmul %11, %3, %cst {dimension_numbers = #tpu.dot_dimension_numbers<[1], [0], [0], [1], [0, 0, 1, 1], [], []>} : vector<128x8xf32>, vector<8x128xf32>, vector<128x128xf32> -> vector<128x128xf32>
    %13 = tpu.iota {dimensions = array<i32: 0>} : vector<8x128xi32>
    %c8_i32 = arith.constant 8 : i32
    %14 = arith.muli %arg0, %c8_i32 : i32
    %15 = vector.broadcast %14 : i32 to vector<8x128xi32>
    %16 = arith.addi %13, %15 : vector<8x128xi32>
    %17 = vector.broadcast %5 : vector<1x128xi32> to vector<8x128xi32>
    %18 = arith.cmpi eq, %17, %16 : vector<8x128xi32>
    %cst_8 = arith.constant 0.000000e+00 : f32
    %19 = vector.shape_cast %6 : vector<1x128xf32> to vector<1x128xf32>
    %20 = vector.broadcast %19 : vector<1x128xf32> to vector<8x128xf32>
    %21 = vector.broadcast %cst_8 : f32 to vector<8x128xf32>
    %22 = arith.select %18, %20, %21 : vector<8x128xi1>, vector<8x128xf32>
    %c0_9 = arith.constant 0 : index
    %c0_10 = arith.constant 0 : index
    %23 = vector.load %arg9[%c0_9, %c0_10] : memref<8x128xf32, #tpu.memory_space<vmem>>, vector<8x128xf32>
    %cst_11 = arith.constant dense<0.000000e+00> : vector<8x128xf32>
    %24 = tpu.matmul %22, %12, %cst_11 {dimension_numbers = #tpu.dot_dimension_numbers<[1], [0], [0], [1], [0, 0, 1, 1], [], []>} : vector<8x128xf32>, vector<128x128xf32>, vector<8x128xf32> -> vector<8x128xf32>
    %25 = arith.addf %23, %24 : vector<8x128xf32>
    %c0_12 = arith.constant 0 : index
    %c0_13 = arith.constant 0 : index
    %26 = vector.load %arg9[%c0_12, %c0_13] : memref<8x128xf32, #tpu.memory_space<vmem>>, vector<8x128xf32>
    tpu.vector_store %arg9[%c0_12, %c0_13], %25 {strides = array<i32>} : memref<8x128xf32, #tpu.memory_space<vmem>>, vector<8x128xf32>,
    %c0_i32_14 = arith.constant 0 : i32
    %27 = arith.cmpi eq, %arg1, %c0_i32_14 : i32
    %28 = arith.extui %27 : i1 to i32
    %c0_i32_15 = arith.constant 0 : i32
    %29 = arith.cmpi ne, %28, %c0_i32_15 : i32
    scf.if %29 {
      %c0_16 = arith.constant 0 : index
      %c0_17 = arith.constant 0 : index
      %30 = vector.load %arg9[%c0_16, %c0_17] : memref<8x128xf32, #tpu.memory_space<vmem>>, vector<8x128xf32>
      %c0_18 = arith.constant 0 : index
      %c0_19 = arith.constant 0 : index
      %31 = vector.load %arg3[%c0_18, %c0_19] : memref<128x128xf32, #tpu.memory_space<vmem>>, vector<128x128xf32>
      %cst_20 = arith.constant dense<0.000000e+00> : vector<8x128xf32>
      %32 = tpu.matmul %30, %31, %cst_20 {dimension_numbers = #tpu.dot_dimension_numbers<[1], [0], [0], [1], [0, 0, 1, 1], [], []>} : vector<8x128xf32>, vector<128x128xf32>, vector<8x128xf32> -> vector<8x128xf32>
      %c0_21 = arith.constant 0 : index
      %c0_22 = arith.constant 0 : index
      %33 = vector.load %arg4[%c0_21, %c0_22] : memref<1x128xf32, #tpu.memory_space<vmem>>, vector<1x128xf32>
      %34 = vector.broadcast %33 : vector<1x128xf32> to vector<8x128xf32>
      %35 = arith.addf %32, %34 : vector<8x128xf32>
      %c0_23 = arith.constant 0 : index
      %c0_24 = arith.constant 0 : index
      %36 = vector.load %arg8[%c0_23, %c0_24] : memref<8x128xf32, #tpu.memory_space<vmem>>, vector<8x128xf32>
      tpu.vector_store %arg8[%c0_23, %c0_24], %35 {strides = array<i32>} : memref<8x128xf32, #tpu.memory_space<vmem>>, vector<8x128xf32>,
    } else {
    }
    return
  }
  func.func @transform_0(%arg0: i32, %arg1: i32) -> (i32, i32) {
    %c0_i32 = arith.constant 0 : i32
    %c0_i32_0 = arith.constant 0 : i32
    %c0_i32_1 = arith.constant 0 : i32
    return %c0_i32, %c0_i32_0 : i32, i32
  }
  func.func @transform_1(%arg0: i32, %arg1: i32) -> (i32, i32) {
    %c0_i32 = arith.constant 0 : i32
    %c0_i32_0 = arith.constant 0 : i32
    %c0_i32_1 = arith.constant 0 : i32
    return %c0_i32, %c0_i32_0 : i32, i32
  }
  func.func @transform_2(%arg0: i32, %arg1: i32) -> (i32, i32) {
    %c0_i32 = arith.constant 0 : i32
    %c0_i32_0 = arith.constant 0 : i32
    %c0_i32_1 = arith.constant 0 : i32
    return %c0_i32, %c0_i32_0 : i32, i32
  }
  func.func @transform_3(%arg0: i32, %arg1: i32) -> (i32, i32) {
    %c0_i32 = arith.constant 0 : i32
    %c0_i32_0 = arith.constant 0 : i32
    return %arg1, %c0_i32 : i32, i32
  }
  func.func @transform_4(%arg0: i32, %arg1: i32) -> (i32, i32) {
    %c0_i32 = arith.constant 0 : i32
    %c0_i32_0 = arith.constant 0 : i32
    return %c0_i32, %arg1 : i32, i32
  }
  func.func @transform_5(%arg0: i32, %arg1: i32) -> (i32, i32) {
    %c0_i32 = arith.constant 0 : i32
    %c0_i32_0 = arith.constant 0 : i32
    return %c0_i32, %arg1 : i32, i32
  }
  func.func @transform_6(%arg0: i32, %arg1: i32) -> (i32, i32) {
    %c0_i32 = arith.constant 0 : i32
    %c0_i32_0 = arith.constant 0 : i32
    return %arg0, %c0_i32 : i32, i32
  }
}

</mosaic_0001>

<bundles_post_ra>
// kernel: tpu_custom_call.1
= control target key start
LH: loop header
LB: loop body
LE: loop exit
PB: predicated region body
PF: predicated region fallthrough
CT: control target
= control target key end

     0   :  { %11 = vsyncpa [#allocation4], 0  ;;  %s1026_s0 = inlined_call_operand.hbm [shape: f32[8,128], index: 0, kind: input, shape index: {}]   ;;  %s1027_s1 = inlined_call_operand.vmem [shape: f32[128,128], index: 1, kind: input, shape index: {}]   ;;  %s1028_s2 = inlined_call_operand.vmem [shape: f32[1,128], index: 2, kind: input, shape index: {}]   ;;  %s1029_s3 = inlined_call_operand.vmem [shape: s32[128,1], index: 3, kind: input, shape index: {}]   ;;  %s1030_s4 = inlined_call_operand.vmem [shape: s32[1,128], index: 4, kind: input, shape index: {}]   ;;  %s1031_s5 = inlined_call_operand.vmem [shape: f32[1,128], index: 5, kind: input, shape index: {}]   ;;  %s1032_s6 = inlined_call_operand.hbm [shape: f32[8,128], index: 6, kind: output, shape index: {}]  }
   0x1   :  { %12 = vsyncpa [#allocation5], 0  ;;  %s789_s21 = smov [#allocation3]  }
   0x2   :  { %s19_s22 = sshll.u32 %s789_s21, 4  ;;  %s20_s22 = int_to_ptr.vmem [resolvable:$true] %s19_s22 }
   0x3   :  { %s753_s23 = scalar_lea.vmem %s20_s22, 128  ;;  %p758_p1 = scmp.lt.s32.totalorder %s20_s22, %s20_s22 }
   0x4   :  { %p754_p0 = scmp.ne.s32.totalorder %s20_s22, %s753_s23  ;;  %p759_p2 = scmp.lt.s32.totalorder %s753_s23, %s753_s23 }
   0x6   :  { %p760_p3 = por %p759_p2, %p758_p1 }
   0x8   :  { %p761_p4 = pnand %p760_p3, %p754_p0 }
   0xa   :  { %764 = shalt.err (!%p761_p4)
}
   0xb   :  { %22 = dma.hbm_to_vmem [thread:$0]  %s1026_s0, 128, %s20_s22, [#allocation4]  }
   0xc   :  { %785 = dma.done.wait [#allocation4], 128  }
   0xd   :  { %786 = vsyncadd [#allocation4], 4294967168  ;;  %v790_v0 = vmov 0   ;;  %v791_v1 = vmov 0.0   ;;  %v44_v2 = vld [vmem:[%s1029_s3 + $0x10] sm:$0xff]  ;;  %v42_v3 = vld [vmem:[%s1029_s3] sm:$0xff]  ;;  %v60_v19 = vlaneseq }
   0xe   :  { %744 = vset.pattern.permute.xlu1 %v790_v0  ;;  %743 = vset.pattern.permute.xlu0 %v790_v0  ;;  %v45_v4 = vld [vmem:[%s1029_s3 + $0x18] sm:$0xff]  ;;  %v43_v5 = vld [vmem:[%s1029_s3 + $0x8] sm:$0xff]  ;;  %v41_v6 = vld [vmem:[#allocation3] sm:$0xff]  ;;  %vm158_vm0 = vcmask 64512  }
   0xf   :  { %668 = vmatprep.subr.mxu1 %v791_v1  ;;  %69 = vperm.xlu1 %744, %v44_v2   ;;  %v47_v7 = vld [vmem:[%s1029_s3 + $0x28] sm:$0xff]  ;;  %v46_v8 = vld [vmem:[%s1029_s3 + $0x20] sm:$0xff]  ;;  %v49_v9 = vld [vmem:[%s1029_s3 + $0x38] sm:$0xff]  ;;  %v883_v20 = vand.u32 127, %v60_v19 }
  0x10   :  { %63 = vperm.xlu0 %743, %v42_v3   ;;  %642 = vmatprep.subr.mxu0 %v41_v6  ;;  %v48_v10 = vld [vmem:[%s1029_s3 + $0x30] sm:$0xff]  ;;  %v51_v11 = vld [vmem:[%s1029_s3 + $0x48] sm:$0xff]  ;;  %v50_v12 = vld [vmem:[%s1029_s3 + $0x40] sm:$0xff] }
  0x11   :  { %643 = vmatpush3.msra.mxu0 %v41_v6  ;;  %v53_v13 = vld [vmem:[%s1029_s3 + $0x58] sm:$0xff]  ;;  %v52_v14 = vld [vmem:[%s1029_s3 + $0x50] sm:$0xff]  ;;  %v55_v15 = vld [vmem:[%s1029_s3 + $0x68] sm:$0xff] }
  0x12   :  { %703 = vmatprep.subr.mxu0 %v791_v1  ;;  %v54_v16 = vld [vmem:[%s1029_s3 + $0x60] sm:$0xff]  ;;  %v57_v17 = vld [vmem:[%s1029_s3 + $0x78] sm:$0xff]  ;;  %v56_v18 = vld [vmem:[%s1029_s3 + $0x70] sm:$0xff] }
  0x13   :  { %72 = vperm.xlu1 %744, %v45_v4   ;;  %v461_v53 = vld [vmem:[%s1027_s1 + $0x78] sm:$0xff]  ;;  %v460_v54 = vld [vmem:[%s1027_s1 + $0x70] sm:$0xff]  ;;  %v459_v55 = vld [vmem:[%s1027_s1 + $0x68] sm:$0xff] }
  0x14   :  { %66 = vperm.xlu0 %743, %v43_v5   ;;  %v458_v56 = vld [vmem:[%s1027_s1 + $0x60] sm:$0xff]  ;;  %v457_v57 = vld [vmem:[%s1027_s1 + $0x58] sm:$0xff]  ;;  %v456_v58 = vld [vmem:[%s1027_s1 + $0x50] sm:$0xff] }
  0x15   :  { %v455_v59 = vld [vmem:[%s1027_s1 + $0x48] sm:$0xff]  ;;  %v454_v60 = vld [vmem:[%s1027_s1 + $0x40] sm:$0xff]  ;;  %v453_v61 = vld [vmem:[%s1027_s1 + $0x38] sm:$0xff] }
  0x16   :  { %v452_v62 = vld [vmem:[%s1027_s1 + $0x30] sm:$0xff]  ;;  %v451_v63 = vld [vmem:[%s1027_s1 + $0x28] sm:$0xff]  ;;  %v450_v0 = vld [vmem:[%s1027_s1 + $0x20] sm:$0xff] }
  0x17   :  { %78 = vperm.xlu1 %744, %v47_v7   ;;  %v449_v2 = vld [vmem:[%s1027_s1 + $0x18] sm:$0xff]  ;;  %v448_v3 = vld [vmem:[%s1027_s1 + $0x10] sm:$0xff]  ;;  %v447_v4 = vld [vmem:[%s1027_s1 + $0x8] sm:$0xff] }
  0x18   :  { %75 = vperm.xlu0 %743, %v46_v8   ;;  %v446_v5 = vld [vmem:[%s1027_s1] sm:$0xff] }
  0x1b   :  { %84 = vperm.xlu1 %744, %v49_v9  }
  0x1c   :  { %81 = vperm.xlu0 %743, %v48_v10  }
  0x1f   :  { %90 = vperm.xlu1 %744, %v51_v11  }
  0x20   :  { %87 = vperm.xlu0 %743, %v50_v12  }
  0x23   :  { %96 = vperm.xlu1 %744, %v53_v13  }
  0x24   :  { %93 = vperm.xlu0 %743, %v52_v14  }
  0x27   :  { %102 = vperm.xlu1 %744, %v55_v15  }
  0x28   :  { %99 = vperm.xlu0 %743, %v54_v16  }
  0x2b   :  { %108 = vperm.xlu1 %744, %v57_v17  }
  0x2c   :  { %105 = vperm.xlu0 %743, %v56_v18  }
  0x8a   :  { %v70_v21 = vpop.permute.xlu1 %69 }
  0x8b   :  { %v64_v22 = vpop.permute.xlu0 %63  ;;  %vm112_vm2 = vcmp.eq.s32.totalorder %v70_v21, %v883_v20 }
  0x8c   :  { %vm110_vm1 = vcmp.eq.s32.totalorder %v64_v22, %v883_v20  ;;  %v557_v26 = vsel %vm112_vm2, 1.0, %v791_v1  ;;  %vm792_vm2 = vmmov 0  }
  0x8d   :  { %v555_v23 = vsel %vm110_vm1, 1.0, %v791_v1  ;;  %700 = vmatprep.mubr.msk.f32.mxu1 %vm792_vm2, %v791_v1 }
  0x8e   :  { %644 = vmatprep.mubr.msk.f32.mxu0 %vm158_vm0, %v555_v23  ;;  %v73_v24 = vpop.permute.xlu1 %72  ;;  %v353_v23 = vshrl.u32 %v60_v19, 7 }
  0x8f   :  { %v67_v25 = vpop.permute.xlu0 %66  ;;  %vm113_vm4 = vcmp.eq.s32.totalorder %v73_v24, %v883_v20  ;;  %v587_v24 = vld [vmem:[%s1030_s4] ss:$0 sm:$0xff]  ;;  %s793_s4 = smov [#allocation6]  }
  0x90   :  { %vm111_vm3 = vcmp.eq.s32.totalorder %v67_v25, %v883_v20  ;;  %v558_v30 = vsel %vm113_vm4, 1.0, %v791_v1  ;;  %v588_v25 = vld [vmem:[%s1031_s5] ss:$0 sm:$0xff]  ;;  %s546_s18 = sshll.u32 %s793_s4, 4  ;;  %s547_s18 = int_to_ptr.vmem [resolvable:$true] %s546_s18 }
  0x91   :  { %v556_v27 = vsel %vm111_vm3, 1.0, %v791_v1  ;;  %s765_s5 = scalar_lea.vmem %s547_s18, 128  ;;  %p770_p6 = scmp.lt.s32.totalorder %s547_s18, %s547_s18 }
  0x92   :  { %645 = vmatmul.mubr.msk.f32.vlgmr.msra.gmra.mxu0 %vm158_vm0, %v556_v27  ;;  %v79_v28 = vpop.permute.xlu1 %78  ;;  %v590_v27 = vld [vmem:[%s1028_s2] ss:$0 sm:$0xff]  ;;  %p766_p5 = scmp.ne.s32.totalorder %s547_s18, %s765_s5  ;;  %p771_p7 = scmp.lt.s32.totalorder %s765_s5, %s765_s5 }
  0x93   :  { %v76_v29 = vpop.permute.xlu0 %75  ;;  %647 = vmatprep.mubr.msk.f32.mxu0 %vm158_vm0, %v557_v26  ;;  %vm115_vm6 = vcmp.eq.s32.totalorder %v79_v28, %v883_v20  ;;  %704 = vmatpush3.msra.mxu0 %v461_v53 }
  0x94   :  { %vm114_vm5 = vcmp.eq.s32.totalorder %v76_v29, %v883_v20  ;;  %v560_v34 = vsel %vm115_vm6, 1.0, %v791_v1  ;;  %705 = vmatprep.subr.mxu0 %v791_v1  ;;  %p772_p8 = por %p771_p7, %p770_p6 }
  0x95   :  { %v559_v31 = vsel %vm114_vm5, 1.0, %v791_v1  ;;  %706 = vmatpush3.msra.mxu0 %v460_v54 }
  0x96   :  { %648 = vmatmul.mubr.msk.f32.gmra.mxu0 %vm158_vm0, %v558_v30  ;;  %v85_v32 = vpop.permute.xlu1 %84  ;;  %707 = vmatprep.subr.mxu0 %v791_v1  ;;  %p773_p9 = pnand %p772_p8, %p766_p5 }
  0x97   :  { %v82_v33 = vpop.permute.xlu0 %81  ;;  %650 = vmatprep.mubr.msk.f32.mxu0 %vm158_vm0, %v559_v31  ;;  %vm117_vm8 = vcmp.eq.s32.totalorder %v85_v32, %v883_v20  ;;  %708 = vmatpush3.msra.mxu0 %v459_v55 }
  0x98   :  { %vm116_vm7 = vcmp.eq.s32.totalorder %v82_v33, %v883_v20  ;;  %v562_v38 = vsel %vm117_vm8, 1.0, %v791_v1  ;;  %709 = vmatprep.subr.mxu0 %v791_v1 }
  0x99   :  { %v561_v35 = vsel %vm116_vm7, 1.0, %v791_v1  ;;  %710 = vmatpush3.msra.mxu0 %v458_v56 }
  0x9a   :  { %651 = vmatmul.mubr.msk.f32.gmra.mxu0 %vm158_vm0, %v560_v34  ;;  %v91_v36 = vpop.permute.xlu1 %90  ;;  %711 = vmatprep.subr.mxu0 %v791_v1 }
  0x9b   :  { %v88_v37 = vpop.permute.xlu0 %87  ;;  %653 = vmatprep.mubr.msk.f32.mxu0 %vm158_vm0, %v561_v35  ;;  %vm119_vm10 = vcmp.eq.s32.totalorder %v91_v36, %v883_v20  ;;  %712 = vmatpush3.msra.mxu0 %v457_v57 }
  0x9c   :  { %vm118_vm9 = vcmp.eq.s32.totalorder %v88_v37, %v883_v20  ;;  %v564_v42 = vsel %vm119_vm10, 1.0, %v791_v1  ;;  %713 = vmatprep.subr.mxu0 %v791_v1 }
  0x9d   :  { %v563_v39 = vsel %vm118_vm9, 1.0, %v791_v1  ;;  %714 = vmatpush3.msra.mxu0 %v456_v58 }
  0x9e   :  { %654 = vmatmul.mubr.msk.f32.gmra.mxu0 %vm158_vm0, %v562_v38  ;;  %v97_v40 = vpop.permute.xlu1 %96  ;;  %715 = vmatprep.subr.mxu0 %v791_v1 }
  0x9f   :  { %v94_v41 = vpop.permute.xlu0 %93  ;;  %656 = vmatprep.mubr.msk.f32.mxu0 %vm158_vm0, %v563_v39  ;;  %vm121_vm12 = vcmp.eq.s32.totalorder %v97_v40, %v883_v20  ;;  %716 = vmatpush3.msra.mxu0 %v455_v59 }
  0xa0   :  { %vm120_vm11 = vcmp.eq.s32.totalorder %v94_v41, %v883_v20  ;;  %v566_v46 = vsel %vm121_vm12, 1.0, %v791_v1  ;;  %717 = vmatprep.subr.mxu0 %v791_v1 }
  0xa1   :  { %v565_v43 = vsel %vm120_vm11, 1.0, %v791_v1  ;;  %718 = vmatpush3.msra.mxu0 %v454_v60 }
  0xa2   :  { %657 = vmatmul.mubr.msk.f32.gmra.mxu0 %vm158_vm0, %v564_v42  ;;  %v103_v44 = vpop.permute.xlu1 %102  ;;  %719 = vmatprep.subr.mxu0 %v791_v1 }
  0xa3   :  { %v100_v45 = vpop.permute.xlu0 %99  ;;  %659 = vmatprep.mubr.msk.f32.mxu0 %vm158_vm0, %v565_v43  ;;  %vm123_vm14 = vcmp.eq.s32.totalorder %v103_v44, %v883_v20  ;;  %720 = vmatpush3.msra.mxu0 %v453_v61 }
  0xa4   :  { %vm122_vm13 = vcmp.eq.s32.totalorder %v100_v45, %v883_v20  ;;  %v568_v50 = vsel %vm123_vm14, 1.0, %v791_v1  ;;  %721 = vmatprep.subr.mxu0 %v791_v1 }
  0xa5   :  { %v567_v47 = vsel %vm122_vm13, 1.0, %v791_v1  ;;  %722 = vmatpush3.msra.mxu0 %v452_v62 }
  0xa6   :  { %660 = vmatmul.mubr.msk.f32.gmra.mxu0 %vm158_vm0, %v566_v46  ;;  %v109_v48 = vpop.permute.xlu1 %108  ;;  %723 = vmatprep.subr.mxu0 %v791_v1 }
  0xa7   :  { %v106_v49 = vpop.permute.xlu0 %105  ;;  %662 = vmatprep.mubr.msk.f32.mxu0 %vm158_vm0, %v567_v47  ;;  %vm125_vm1 = vcmp.eq.s32.totalorder %v109_v48, %v883_v20  ;;  %724 = vmatpush3.msra.mxu0 %v451_v63 }
  0xa8   :  { %vm124_vm15 = vcmp.eq.s32.totalorder %v106_v49, %v883_v20  ;;  %v570_v52 = vsel %vm125_vm1, 1.0, %v791_v1  ;;  %725 = vmatprep.subr.mxu0 %v791_v1 }
  0xa9   :  { %v569_v51 = vsel %vm124_vm15, 1.0, %v791_v1  ;;  %726 = vmatpush3.msra.mxu0 %v450_v0 }
  0xaa   :  { %663 = vmatmul.mubr.msk.f32.gmra.mxu0 %vm158_vm0, %v568_v50  ;;  %727 = vmatprep.subr.mxu0 %v791_v1 }
  0xab   :  { %665 = vmatprep.mubr.msk.f32.mxu0 %vm158_vm0, %v569_v51  ;;  %728 = vmatpush3.msra.mxu0 %v449_v2 }
  0xac   :  { %729 = vmatprep.subr.mxu0 %v791_v1 }
  0xad   :  { %730 = vmatpush3.msra.mxu0 %v448_v3 }
  0xae   :  { %666 = vmatmul.mubr.msk.f32.gmra.mxu0 %vm158_vm0, %v570_v52  ;;  %731 = vmatprep.subr.mxu0 %v791_v1  ;;  %vm361_vm0 = vcmp.eq.s32.totalorder %v587_v24, %v353_v23 }
  0xaf   :  { %735 = vmatprep.mubr.msk.f32.mxu0 %vm792_vm2, %v791_v1  ;;  %732 = vmatpush3.msra.mxu0 %v447_v4 }
  0xb0   :  { %733 = vmatprep.subr.mxu0 %v791_v1 }
  0xb1   :  { %734 = vmatpush3.msra.mxu0 %v446_v5 }
 0x152   :  { %v646_v6 = vpop.f32.mrf.mxu0 }
 0x154   :  { %v273_v7 = vpop.f32.mrf.mxu0 }
 0x156   :  { %v649_v8 = vpop.f32.mrf.mxu0 }
 0x158   :  { %v283_v9 = vpop.f32.mrf.mxu0 }
 0x15a   :  { %v652_v10 = vpop.f32.mrf.mxu0 }
 0x15c   :  { %v293_v11 = vpop.f32.mrf.mxu0 }
 0x15e   :  { %v655_v12 = vpop.f32.mrf.mxu0 }
 0x160   :  { %v303_v13 = vpop.f32.mrf.mxu0 }
 0x162   :  { %v658_v14 = vpop.f32.mrf.mxu0 }
 0x164   :  { %v313_v15 = vpop.f32.mrf.mxu0 }
 0x166   :  { %v661_v16 = vpop.f32.mrf.mxu0 }
 0x168   :  { %v323_v17 = vpop.f32.mrf.mxu0 }
 0x16a   :  { %v664_v18 = vpop.f32.mrf.mxu0 }
 0x16c   :  { %v333_v20 = vpop.f32.mrf.mxu0 }
 0x16e   :  { %v667_v21 = vpop.f32.mrf.mxu0 }
 0x16f   :  { %669 = vmatpush3.msra.mxu1 %v667_v21 }
 0x170   :  { %v343_v22 = vpop.f32.mrf.mxu0  ;;  %670 = vmatprep.subr.mxu1 %v791_v1 }
 0x171   :  { %671 = vmatpush3.msra.mxu1 %v343_v22 }
 0x172   :  { %672 = vmatprep.subr.mxu1 %v791_v1 }
 0x173   :  { %673 = vmatpush3.msra.mxu1 %v664_v18 }
 0x174   :  { %674 = vmatprep.subr.mxu1 %v791_v1 }
 0x175   :  { %675 = vmatpush3.msra.mxu1 %v333_v20 }
 0x176   :  { %676 = vmatprep.subr.mxu1 %v791_v1 }
 0x177   :  { %677 = vmatpush3.msra.mxu1 %v661_v16 }
 0x178   :  { %678 = vmatprep.subr.mxu1 %v791_v1 }
 0x179   :  { %679 = vmatpush3.msra.mxu1 %v323_v17 }
 0x17a   :  { %680 = vmatprep.subr.mxu1 %v791_v1 }
 0x17b   :  { %681 = vmatpush3.msra.mxu1 %v658_v14 }
 0x17c   :  { %682 = vmatprep.subr.mxu1 %v791_v1 }
 0x17d   :  { %683 = vmatpush3.msra.mxu1 %v313_v15 }
 0x17e   :  { %684 = vmatprep.subr.mxu1 %v791_v1 }
 0x17f   :  { %685 = vmatpush3.msra.mxu1 %v655_v12 }
 0x180   :  { %686 = vmatprep.subr.mxu1 %v791_v1 }
 0x181   :  { %687 = vmatpush3.msra.mxu1 %v303_v13 }
 0x182   :  { %688 = vmatprep.subr.mxu1 %v791_v1 }
 0x183   :  { %689 = vmatpush3.msra.mxu1 %v652_v10 }
 0x184   :  { %690 = vmatprep.subr.mxu1 %v791_v1 }
 0x185   :  { %691 = vmatpush3.msra.mxu1 %v293_v11 }
 0x186   :  { %692 = vmatprep.subr.mxu1 %v791_v1 }
 0x187   :  { %693 = vmatpush3.msra.mxu1 %v649_v8 }
 0x188   :  { %694 = vmatprep.subr.mxu1 %v791_v1 }
 0x189   :  { %695 = vmatpush3.msra.mxu1 %v283_v9 }
 0x18a   :  { %696 = vmatprep.subr.mxu1 %v791_v1 }
 0x18b   :  { %697 = vmatpush3.msra.mxu1 %v646_v6 }
 0x18c   :  { %698 = vmatprep.subr.mxu1 %v791_v1 }
 0x18d   :  { %699 = vmatpush3.msra.mxu1 %v273_v7 }
 0x18e   :  { %701 = vmatmul.mubr.msk.f32.vlgmr.msra.gmra.mxu1 %vm361_vm0, %v588_v25 }
 0x24e   :  { %v436_v19 = vpop.f32.mrf.mxu1 }
 0x24f   :  { %736 = vmatmul.mubr.f32.vlgmr.msra.gmra.mxu0 %v436_v19 }
 0x250   :  { %v702_v26 = vpop.f32.mrf.mxu1 }
 0x30f   :  { %v535_v28 = vpop.f32.mrf.mxu0 }
 0x310   :  { %v536_v29 = vadd.f32 %v590_v27, %v535_v28 }
 0x311   :  { %v737_v30 = vpop.f32.mrf.mxu0 }
 0x312   :  { %539 = vst [vmem:[#allocation6] sm:$0xff] %v536_v29 }
 0x313   :  { %776 = shalt.err (!%p773_p9)
}
 0x314   :  { %549 = dma.vmem_to_hbm [thread:$0]  %s547_s18, 128, %s1032_s6, [#allocation5]  }
 0x315   :  { %787 = dma.done.wait [#allocation5], 128  }
 0x316   :  { %788 = vsyncadd [#allocation5], 4294967168 }
 0x317   :  { %553 = vsyncpa [#allocation4], 1 }
 0x318   :  { %554 = vsyncpa [#allocation5], 1 }

</bundles_post_ra>
